<compile_context>
chip_gen: v5e
topology: v5e:2x2
jax: 0.10.0
libtpu: 0.0.40
codegen_flags: <defaults>
</compile_context>

<pallas_src>
import functools

import jax
import jax.numpy as jnp
from jax.experimental import pallas as pl
from jax.experimental.pallas import tpu as pltpu


# ---------------------------------------------------------------------------
# Kernel
# ---------------------------------------------------------------------------
def _layernorm_kernel(params_ref, x_ref, o_ref, *, eps, hidden, k):
    """Normalize each of the `k` contiguous `hidden`-wide lane segments of the
    (tile_rows, k*hidden) block.  k == 1 is the plain (un-packed) case."""
    x = x_ref[...].astype(jnp.float32)
    mult = params_ref[0]
    add = params_ref[1]
    # torch.var default is unbiased (Bessel): divide by (N - 1).
    # Precondition: hidden > 1 (hidden == 1 gives NaN, same as torch.var).
    inv_nm1 = jnp.float32(1.0 / (hidden - 1)) if hidden > 1 else jnp.float32(jnp.nan)
    eps_f = jnp.float32(eps)

    parts = []
    for j in range(k):  # small Python constant, unrolled at trace time
        xs = x[:, j * hidden:(j + 1) * hidden] if k > 1 else x
        m = jnp.mean(xs, axis=-1, keepdims=True)
        d = xs - m
        v = jnp.sum(d * d, axis=-1, keepdims=True) * inv_nm1
        scale = jax.lax.rsqrt(v + eps_f) * mult      # fold affine mult into rsqrt
        parts.append(d * scale + add)

    y = parts[0] if k == 1 else jnp.concatenate(parts, axis=-1)
    o_ref[...] = y.astype(o_ref.dtype)


# ---------------------------------------------------------------------------
# Tiling heuristics
# ---------------------------------------------------------------------------
def _sublane(dtype):
    # Sublane packing per 32-bit vreg word: f32 -> 8, bf16 -> 16, int8/fp8 -> 32.
    return {4: 8, 2: 16, 1: 32}.get(jnp.dtype(dtype).itemsize, 8)


def _vmem_capacity_bytes():
    """Per-core VMEM capacity; conservative 64 MiB fallback (v7x per-TC)."""
    try:
        info = pltpu.get_tpu_info()
        cap = getattr(info, "vmem_capacity_bytes", None)
        if cap:
            return int(cap)
    except Exception:
        pass
    return 64 * 1024 * 1024


def _vmem_limit_bytes(vmem_cap):
    # v7x (64 MiB physical) -> 48 MiB scoped; v5e/v6e (128 MiB) -> 64 MiB scoped.
    return min(64 * 1024 * 1024, max(32 * 1024 * 1024, (vmem_cap * 3) // 4))


def _choose_tiling(rows, width, dtype, vmem_cap):
    """Pick (tile_rows, grid_steps, vmem_limit):
       - ~6-8 MiB input blocks (amortize ~0.35us per-grid-step overhead),
       - total on-chip footprint (2x in + 2x out double-buffered blocks plus ~4x
         f32 upcast temporaries) inside the scoped-VMEM budget for this chip,
       - even, >=4-step grid when possible so v7x's 2 TensorCores split evenly."""
    sub = _sublane(dtype)
    itemsize = jnp.dtype(dtype).itemsize

    vmem_limit = _vmem_limit_bytes(vmem_cap)
    footprint_budget = (vmem_limit * 7) // 8
    target_block = 8 * 1024 * 1024 if vmem_cap >= 96 * 1024 * 1024 else 6 * 1024 * 1024

    per_row_onchip = width * (4 * itemsize + 4 * 4)       # dbl-buffered IO + f32 temps
    by_block = max(sub, target_block // max(1, width * itemsize))
    by_footprint = max(sub, footprint_budget // max(1, per_row_onchip))

    tile = min(rows, by_block, by_footprint)
    if tile >= rows:
        return rows, 1, vmem_limit                        # single full-row block

    tile = max(sub, (tile // sub) * sub)                  # sublane multiple
    steps = pl.cdiv(rows, tile)
    if rows >= 4 * sub and steps > 1:
        steps = max(steps, 4)
        if steps % 2:
            steps += 1                                    # even split across 2 TCs
        tile = -(-rows // steps)
        tile = ((tile + sub - 1) // sub) * sub
        tile = max(sub, min(tile, rows))
        steps = pl.cdiv(rows, tile)
    return tile, steps, vmem_limit


# ---------------------------------------------------------------------------
# Wrapper
# ---------------------------------------------------------------------------
def layernorm_pallas(x, mult, add, eps=1e-5, tile_rows=None):
    """LayerNorm over the last axis with scalar affine params (mult, add)."""
    orig_shape = x.shape
    hidden = int(orig_shape[-1])
    rows = 1
    for s in orig_shape[:-1]:
        rows *= int(s)

    # Lane-dense repack: fold k rows into the lane dim when hidden divides 128,
    # so loads/stores use the full 128-lane width (unmasked vst).
    k = 1
    if 1 < hidden < 128 and 128 % hidden == 0:
        k_cand = 128 // hidden
        if k_cand <= 16 and rows % k_cand == 0:
            k = k_cand
    # TODO(synk): pad rows to a multiple of k (and slice the result) so odd row
    # counts can also take the lane-dense path; they currently fall back.

    p_rows = rows // k
    width = hidden * k
    x2d = x.reshape(p_rows, width)

    vmem_cap = _vmem_capacity_bytes()
    if tile_rows is None:
        tile_rows, grid_rows, vmem_limit = _choose_tiling(p_rows, width, x.dtype, vmem_cap)
    else:
        grid_rows = pl.cdiv(p_rows, tile_rows)
        vmem_limit = _vmem_limit_bytes(vmem_cap)

    # Scalar affine params in SMEM (safe for traced/learned parameters under jit).
    params = jnp.asarray([mult, add], dtype=jnp.float32)

    itemsize = jnp.dtype(x.dtype).itemsize
    cost = pl.CostEstimate(
        flops=7 * rows * hidden,
        transcendentals=rows,
        bytes_accessed=2 * rows * hidden * itemsize,
    )

    kernel = functools.partial(_layernorm_kernel, eps=float(eps), hidden=hidden, k=k)

    out2d = pl.pallas_call(
        kernel,
        out_shape=jax.ShapeDtypeStruct((p_rows, width), x.dtype),
        grid_spec=pltpu.PrefetchScalarGridSpec(
            num_scalar_prefetch=0,
            grid=(grid_rows,),
            in_specs=[
                pl.BlockSpec(memory_space=pltpu.MemorySpace.SMEM),
                pl.BlockSpec((tile_rows, width), lambda i: (i, 0)),
            ],
            out_specs=pl.BlockSpec((tile_rows, width), lambda i: (i, 0)),
        ),
        compiler_params=pltpu.CompilerParams(
            dimension_semantics=("parallel",),
            vmem_limit_bytes=int(vmem_limit),
        ),
        cost_estimate=cost,
    )(params, x2d)

    return out2d.reshape(orig_shape)


def layernorm_ref(x, mult, add, eps=1e-5):
    # Pure-JAX reference matching the PyTorch module (unbiased variance).
    xf = x.astype(jnp.float32)
    m = jnp.mean(xf, axis=-1, keepdims=True)
    d = xf - m
    v = jnp.sum(d * d, axis=-1, keepdims=True) / (x.shape[-1] - 1)
    y = d / jnp.sqrt(v + eps)
    return (y * mult + add).astype(x.dtype)


if __name__ == "__main__":
    key = jax.random.PRNGKey(0)
    k0, k1, k2 = jax.random.split(key, 3)
    eps = 1e-5

    # (batch=2, seq=8, hidden=32): lane-dense packed path (4 rows folded into lanes).
    x1 = jax.random.normal(k0, (2, 8, 32), dtype=jnp.float32)
    # (batch=2, seq=8, hidden=256): standard path, lane width a multiple of 128.
    x2 = jax.random.normal(k1, (2, 8, 256), dtype=jnp.float32)
    # Awkward dims (rows=15, hidden=20): standard path, explicit tile -> partial last tile.
    x3 = jax.random.normal(k2, (3, 5, 20), dtype=jnp.float32)

    # Module-init params (mult=1.0, add=0.0), as in nn.Parameter(torch.tensor(...)).
    for x in (x1, x2):
        out = jax.block_until_ready(layernorm_pallas(x, 1.0, 0.0, eps=eps))
        ref = layernorm_ref(x, 1.0, 0.0, eps=eps)
        assert out.shape == x.shape
        assert jnp.allclose(out, ref, atol=1e-5, rtol=1e-5), f"mismatch for {x.shape}"

    # Non-trivial affine params + forced 2-step grid with a partial last tile.
    out = jax.block_until_ready(layernorm_pallas(x3, 1.2345, -0.5, eps=eps, tile_rows=8))
    ref = layernorm_ref(x3, 1.2345, -0.5, eps=eps)
    assert out.shape == x3.shape
    assert jnp.allclose(out, ref, atol=1e-5, rtol=1e-5), "mismatch for awkward shape"

    print("KERNEL_OK")
</pallas_src>

<mosaic_0001>
module attributes {stable_mosaic.version = 11 : i64} {
  func.func @_layernorm_kernel(%arg0: i32, %arg1: memref<2xf32, #tpu.memory_space<smem>>, %arg2: memref<4x128xf32, #tpu.memory_space<vmem>>, %arg3: memref<4x128xf32, #tpu.memory_space<vmem>>) attributes {dimension_semantics = [#tpu.dimension_semantics<parallel>], iteration_bounds = array<i64: 1>, scalar_prefetch = 0 : i64, scratch_operands = 0 : i64, tpu.core_type = #tpu.core_type<tc>, window_params = [{transform_indices = @transform_0, window_bounds = array<i64: 2>}, {transform_indices = @transform_1, window_bounds = array<i64: 4, 128>}, {transform_indices = @transform_2, window_bounds = array<i64: 4, 128>}]} {
    %c0 = arith.constant 0 : index
    %c0_0 = arith.constant 0 : index
    %0 = vector.load %arg2[%c0, %c0_0] : memref<4x128xf32, #tpu.memory_space<vmem>>, vector<4x128xf32>
    %c0_1 = arith.constant 0 : index
    %1 = memref.load %arg1[%c0_1] : memref<2xf32, #tpu.memory_space<smem>>
    %c1 = arith.constant 1 : index
    %2 = memref.load %arg1[%c1] : memref<2xf32, #tpu.memory_space<smem>>
    %3 = vector.extract_strided_slice %0 {offsets = [0, 0], sizes = [4, 32], strides = [1, 1]} : vector<4x128xf32> to vector<4x32xf32>
    %cst = arith.constant dense<0.000000e+00> : vector<4xf32>
    %4 = vector.multi_reduction <add>, %3, %cst [1] : vector<4x32xf32> to vector<4xf32>
    %5 = vector.shape_cast %4 : vector<4xf32> to vector<4x1xf32>
    %cst_2 = arith.constant 3.200000e+01 : f32
    %6 = vector.broadcast %cst_2 : f32 to vector<4x1xf32>
    %7 = arith.divf %5, %6 : vector<4x1xf32>
    %8 = vector.broadcast %7 : vector<4x1xf32> to vector<4x32xf32>
    %9 = arith.subf %3, %8 : vector<4x32xf32>
    %10 = arith.mulf %9, %9 : vector<4x32xf32>
    %cst_3 = arith.constant dense<0.000000e+00> : vector<4xf32>
    %11 = vector.multi_reduction <add>, %10, %cst_3 [1] : vector<4x32xf32> to vector<4xf32>
    %12 = vector.shape_cast %11 : vector<4xf32> to vector<4x1xf32>
    %cst_4 = arith.constant 0.0322580636 : f32
    %13 = vector.broadcast %cst_4 : f32 to vector<4x1xf32>
    %14 = arith.mulf %12, %13 : vector<4x1xf32>
    %cst_5 = arith.constant 9.99999974E-6 : f32
    %15 = vector.broadcast %cst_5 : f32 to vector<4x1xf32>
    %16 = arith.addf %14, %15 : vector<4x1xf32>
    %17 = math.rsqrt %16 : vector<4x1xf32>
    %18 = vector.broadcast %1 : f32 to vector<4x1xf32>
    %19 = arith.mulf %17, %18 : vector<4x1xf32>
    %20 = vector.broadcast %19 : vector<4x1xf32> to vector<4x32xf32>
    %21 = arith.mulf %9, %20 : vector<4x32xf32>
    %22 = vector.broadcast %2 : f32 to vector<4x32xf32>
    %23 = arith.addf %21, %22 : vector<4x32xf32>
    %24 = vector.extract_strided_slice %0 {offsets = [0, 32], sizes = [4, 32], strides = [1, 1]} : vector<4x128xf32> to vector<4x32xf32>
    %cst_6 = arith.constant dense<0.000000e+00> : vector<4xf32>
    %25 = vector.multi_reduction <add>, %24, %cst_6 [1] : vector<4x32xf32> to vector<4xf32>
    %26 = vector.shape_cast %25 : vector<4xf32> to vector<4x1xf32>
    %cst_7 = arith.constant 3.200000e+01 : f32
    %27 = vector.broadcast %cst_7 : f32 to vector<4x1xf32>
    %28 = arith.divf %26, %27 : vector<4x1xf32>
    %29 = vector.broadcast %28 : vector<4x1xf32> to vector<4x32xf32>
    %30 = arith.subf %24, %29 : vector<4x32xf32>
    %31 = arith.mulf %30, %30 : vector<4x32xf32>
    %cst_8 = arith.constant dense<0.000000e+00> : vector<4xf32>
    %32 = vector.multi_reduction <add>, %31, %cst_8 [1] : vector<4x32xf32> to vector<4xf32>
    %33 = vector.shape_cast %32 : vector<4xf32> to vector<4x1xf32>
    %cst_9 = arith.constant 0.0322580636 : f32
    %34 = vector.broadcast %cst_9 : f32 to vector<4x1xf32>
    %35 = arith.mulf %33, %34 : vector<4x1xf32>
    %cst_10 = arith.constant 9.99999974E-6 : f32
    %36 = vector.broadcast %cst_10 : f32 to vector<4x1xf32>
    %37 = arith.addf %35, %36 : vector<4x1xf32>
    %38 = math.rsqrt %37 : vector<4x1xf32>
    %39 = vector.broadcast %1 : f32 to vector<4x1xf32>
    %40 = arith.mulf %38, %39 : vector<4x1xf32>
    %41 = vector.broadcast %40 : vector<4x1xf32> to vector<4x32xf32>
    %42 = arith.mulf %30, %41 : vector<4x32xf32>
    %43 = vector.broadcast %2 : f32 to vector<4x32xf32>
    %44 = arith.addf %42, %43 : vector<4x32xf32>
    %45 = vector.extract_strided_slice %0 {offsets = [0, 64], sizes = [4, 32], strides = [1, 1]} : vector<4x128xf32> to vector<4x32xf32>
    %cst_11 = arith.constant dense<0.000000e+00> : vector<4xf32>
    %46 = vector.multi_reduction <add>, %45, %cst_11 [1] : vector<4x32xf32> to vector<4xf32>
    %47 = vector.shape_cast %46 : vector<4xf32> to vector<4x1xf32>
    %cst_12 = arith.constant 3.200000e+01 : f32
    %48 = vector.broadcast %cst_12 : f32 to vector<4x1xf32>
    %49 = arith.divf %47, %48 : vector<4x1xf32>
    %50 = vector.broadcast %49 : vector<4x1xf32> to vector<4x32xf32>
    %51 = arith.subf %45, %50 : vector<4x32xf32>
    %52 = arith.mulf %51, %51 : vector<4x32xf32>
    %cst_13 = arith.constant dense<0.000000e+00> : vector<4xf32>
    %53 = vector.multi_reduction <add>, %52, %cst_13 [1] : vector<4x32xf32> to vector<4xf32>
    %54 = vector.shape_cast %53 : vector<4xf32> to vector<4x1xf32>
    %cst_14 = arith.constant 0.0322580636 : f32
    %55 = vector.broadcast %cst_14 : f32 to vector<4x1xf32>
    %56 = arith.mulf %54, %55 : vector<4x1xf32>
    %cst_15 = arith.constant 9.99999974E-6 : f32
    %57 = vector.broadcast %cst_15 : f32 to vector<4x1xf32>
    %58 = arith.addf %56, %57 : vector<4x1xf32>
    %59 = math.rsqrt %58 : vector<4x1xf32>
    %60 = vector.broadcast %1 : f32 to vector<4x1xf32>
    %61 = arith.mulf %59, %60 : vector<4x1xf32>
    %62 = vector.broadcast %61 : vector<4x1xf32> to vector<4x32xf32>
    %63 = arith.mulf %51, %62 : vector<4x32xf32>
    %64 = vector.broadcast %2 : f32 to vector<4x32xf32>
    %65 = arith.addf %63, %64 : vector<4x32xf32>
    %66 = vector.extract_strided_slice %0 {offsets = [0, 96], sizes = [4, 32], strides = [1, 1]} : vector<4x128xf32> to vector<4x32xf32>
    %cst_16 = arith.constant dense<0.000000e+00> : vector<4xf32>
    %67 = vector.multi_reduction <add>, %66, %cst_16 [1] : vector<4x32xf32> to vector<4xf32>
    %68 = vector.shape_cast %67 : vector<4xf32> to vector<4x1xf32>
    %cst_17 = arith.constant 3.200000e+01 : f32
    %69 = vector.broadcast %cst_17 : f32 to vector<4x1xf32>
    %70 = arith.divf %68, %69 : vector<4x1xf32>
    %71 = vector.broadcast %70 : vector<4x1xf32> to vector<4x32xf32>
    %72 = arith.subf %66, %71 : vector<4x32xf32>
    %73 = arith.mulf %72, %72 : vector<4x32xf32>
    %cst_18 = arith.constant dense<0.000000e+00> : vector<4xf32>
    %74 = vector.multi_reduction <add>, %73, %cst_18 [1] : vector<4x32xf32> to vector<4xf32>
    %75 = vector.shape_cast %74 : vector<4xf32> to vector<4x1xf32>
    %cst_19 = arith.constant 0.0322580636 : f32
    %76 = vector.broadcast %cst_19 : f32 to vector<4x1xf32>
    %77 = arith.mulf %75, %76 : vector<4x1xf32>
    %cst_20 = arith.constant 9.99999974E-6 : f32
    %78 = vector.broadcast %cst_20 : f32 to vector<4x1xf32>
    %79 = arith.addf %77, %78 : vector<4x1xf32>
    %80 = math.rsqrt %79 : vector<4x1xf32>
    %81 = vector.broadcast %1 : f32 to vector<4x1xf32>
    %82 = arith.mulf %80, %81 : vector<4x1xf32>
    %83 = vector.broadcast %82 : vector<4x1xf32> to vector<4x32xf32>
    %84 = arith.mulf %72, %83 : vector<4x32xf32>
    %85 = vector.broadcast %2 : f32 to vector<4x32xf32>
    %86 = arith.addf %84, %85 : vector<4x32xf32>
    %87 = tpu.concatenate %23, %44, %65, %86 in 1 : vector<4x32xf32>, vector<4x32xf32>, vector<4x32xf32>, vector<4x32xf32> -> vector<4x128xf32>
    %c0_21 = arith.constant 0 : index
    %c0_22 = arith.constant 0 : index
    %88 = vector.load %arg3[%c0_21, %c0_22] : memref<4x128xf32, #tpu.memory_space<vmem>>, vector<4x128xf32>
    tpu.vector_store %arg3[%c0_21, %c0_22], %87 {strides = array<i32>} : memref<4x128xf32, #tpu.memory_space<vmem>>, vector<4x128xf32>,
    return
  }
  func.func @transform_0(%arg0: i32) -> i32 {
    %c0_i32 = arith.constant 0 : i32
    %c0_i32_0 = arith.constant 0 : i32
    return %c0_i32 : i32
  }
  func.func @transform_1(%arg0: i32) -> (i32, i32) {
    %c0_i32 = arith.constant 0 : i32
    %c0_i32_0 = arith.constant 0 : i32
    return %arg0, %c0_i32 : i32, i32
  }
  func.func @transform_2(%arg0: i32) -> (i32, i32) {
    %c0_i32 = arith.constant 0 : i32
    %c0_i32_0 = arith.constant 0 : i32
    return %arg0, %c0_i32 : i32, i32
  }
}

</mosaic_0001>

<bundles_post_ra>
// kernel: tpu_custom_call.1
= control target key start
LH: loop header
LB: loop body
LE: loop exit
PB: predicated region body
PF: predicated region fallthrough
CT: control target
= control target key end

     0   :  { %7 = vsyncpa [#allocation5], 0  ;;  %s350_s0 = inlined_call_operand.hbm [shape: f32[2], index: 0, kind: input, shape index: {}]   ;;  %s351_s1 = inlined_call_operand.hbm [shape: f32[4,128], index: 1, kind: input, shape index: {}]   ;;  %s352_s2 = inlined_call_operand.hbm [shape: f32[4,128], index: 2, kind: output, shape index: {}]  }
   0x1   :  { %8 = vsyncpa [#allocation3], 0 }
   0x2   :  { %9 = vsyncpa [#allocation4], 0  ;;  %s15_s11 = sshll.u32 %s350_s0, 4  ;;  %s24_s14 = sshll.u32 %s351_s1, 4  ;;  %s16_s11 = int_to_ptr.hbm [resolvable:$true] %s15_s11  ;;  %s25_s14 = int_to_ptr.hbm [resolvable:$true] %s24_s14 }
   0x3   :  { %s279_s15 = smov [#allocation2]   ;;  %s280_s16 = smov [#allocation6]  }
   0x4   :  { %18 = dma.hbm_to_smem %s16_s11, 16, %s279_s15, [#allocation5]  }
   0x5   :  { %s26_s17 = sshll.u32 %s280_s16, 4  ;;  %s27_s17 = int_to_ptr.vmem [resolvable:$true] %s26_s17 }
   0x6   :  { %29 = dma.hbm_to_vmem [thread:$0]  %s25_s14, 64, %s27_s17, [#allocation3]  }
   0x7   :  { %273 = dma.done.wait [#allocation5], 16  }
   0x8   :  { %274 = vsyncadd [#allocation5], 4294967280 }
   0x9   :  { %275 = dma.done.wait [#allocation3], 64  }
   0xa   :  { %276 = vsyncadd [#allocation3], 4294967232 }
   0xb   :  { %38 = sfence }
   0xc   :  { %v39_v0 = vld [vmem:[#allocation6] sm:$0xf]  ;;  %s281_s18 = smov 96   ;;  %s282_s0 = smov 32   ;;  %vm42_vm0 = vcmask 257024   ;;  %v284_v8 = vmov 32.0  }
   0xd   :  { %77 = vrot.lane.b32.xlu0 %v39_v0, %s281_s18  ;;  %139 = vrot.lane.b32.xlu1 %v39_v0, %s282_s0  ;;  %s283_s1 = smov 64   ;;  %v43_v1 = vsel %vm42_vm0, %v39_v0, 0.0  ;;  %203 = vrcp.f32 %v284_v8  ;;  %s40_s19 = sld [smem:[#allocation2]]  ;;  %vm170_vm14 = vcmask 261120   ;;  %vm172_vm15 = vcmask 523264  }
   0xe   :  { %s195_s20 = sld [smem:[#allocation2 + $0x1]]  ;;  %s285_s21 = smov [#allocation7]  }
   0xf   :  { %s182_s22 = sshll.u32 %s285_s21, 4  ;;  %s184_s25 = sshll.u32 %s352_s2, 4  ;;  %s183_s22 = int_to_ptr.vmem [resolvable:$true] %s182_s22  ;;  %s185_s25 = int_to_ptr.hbm [resolvable:$true] %s184_s25 }
  0x13   :  { %v204_v9 = vpop.eup %203  ;;  %v71_v8 = vstv %s40_s19 }
  0x14   :  { %v47_v10 = vmul.f32 32.0, %v204_v9  ;;  %vm51_vm1 = vweird.f32 %v204_v9 }
  0x15   :  { %108 = vrot.lane.b32.xlu0 %v39_v0, %s283_s1 }
  0x16   :  { %v48_v11 = vsub.f32 1.0, %v47_v10 }
  0x18   :  { %v49_v12 = vmul.f32 %v204_v9, %v48_v11 }
  0x1a   :  { %v50_v13 = vadd.f32 %v204_v9, %v49_v12 }
  0x1c   :  { %v52_v14 = vsel %vm51_vm1, %v204_v9, %v50_v13 }
  0x3f   :  { %44 = vadd.xlane.f32.xlu0 %v43_v1 }
  0x7f   :  { %v78_v2 = vpop.permute.xlu0 %77  ;;  %v140_v6 = vpop.permute.xlu1 %139 }
  0x80   :  { %v80_v3 = vsel %vm42_vm0, %v78_v2, 0.0  ;;  %v142_v7 = vsel %vm42_vm0, %v140_v6, 0.0 }
  0x81   :  { %81 = vadd.xlane.f32.xlu1 %v80_v3 }
  0x87   :  { %v109_v4 = vpop.permute.xlu0 %108 }
  0x88   :  { %v111_v5 = vsel %vm42_vm0, %v109_v4, 0.0 }
  0x89   :  { %112 = vadd.xlane.f32.xlu2 %v111_v5 }
  0x91   :  { %143 = vadd.xlane.f32.xlu2 %v142_v7 }
  0xb2   :  { %v45_v15 = vpop.xlane.xlu0 %44 }
  0xb3   :  { %v53_v16 = vmul.f32 %v52_v14, %v45_v15 }
  0xb5   :  { %v314_v17 = vsub.f32 %v39_v0, %v53_v16 }
  0xb7   :  { %v55_v18 = vmul.f32 %v314_v17, %v314_v17 }
  0xb9   :  { %v56_v19 = vsel %vm42_vm0, %v55_v18, 0.0 }
  0xba   :  { %57 = vadd.xlane.f32.xlu1 %v56_v19 }
  0xf4   :  { %v82_v20 = vpop.xlane.xlu1 %81 }
  0xf5   :  { %v83_v21 = vmul.f32 %v82_v20, %v52_v14 }
  0xf7   :  { %v319_v22 = vsub.f32 %v39_v0, %v83_v21 }
  0xf9   :  { %v85_v23 = vmul.f32 %v319_v22, %v319_v22 }
  0xfb   :  { %87 = vrot.lane.b32.xlu2 %v85_v23, %s281_s18 }
  0xfc   :  { %v113_v24 = vpop.xlane.xlu2 %112 }
  0xfd   :  { %v114_v25 = vmul.f32 %v113_v24, %v52_v14  ;;  %v74_v24 = vstv %s195_s20 }
  0xff   :  { %v324_v26 = vsub.f32 %v39_v0, %v114_v25 }
 0x101   :  { %v116_v27 = vmul.f32 %v324_v26, %v324_v26 }
 0x103   :  { %118 = vrot.lane.b32.xlu2 %v116_v27, %s283_s1 }
 0x104   :  { %v144_v28 = vpop.xlane.xlu2 %143 }
 0x105   :  { %v145_v29 = vmul.f32 %v144_v28, %v52_v14 }
 0x107   :  { %v329_v30 = vsub.f32 %v39_v0, %v145_v29 }
 0x109   :  { %v147_v31 = vmul.f32 %v329_v30, %v329_v30 }
 0x10b   :  { %149 = vrot.lane.b32.xlu2 %v147_v31, %s282_s0 }
 0x12d   :  { %v58_v38 = vpop.xlane.xlu1 %57 }
 0x12e   :  { %v59_v39 = vmul.f32 0.032258064, %v58_v38 }
 0x130   :  { %v60_v40 = vadd.f32 1e-05, %v59_v39 }
 0x132   :  { %205 = vrsqrt.f32 %v60_v40  ;;  %vm67_vm2 = vweird.f32 %v60_v40 }
 0x138   :  { %v206_v44 = vpop.eup %205 }
 0x139   :  { %v62_v47 = vmul.f32 %v206_v44, %v60_v40  ;;  %vm68_vm3 = vweird.f32 %v206_v44 }
 0x13a   :  { %vm337_vm5 = vmor %vm67_vm2, %vm68_vm3 }
 0x13b   :  { %v63_v51 = vmul.f32 %v206_v44, %v62_v47 }
 0x13d   :  { %v64_v56 = vmul.f32 0.5, %v63_v51 }
 0x13f   :  { %v65_v61 = vsub.f32 1.5, %v64_v56 }
 0x141   :  { %v66_v1 = vmul.f32 %v206_v44, %v65_v61 }
 0x143   :  { %v70_v9 = vsel %vm337_vm5, %v206_v44, %v66_v1 }
 0x144   :  { %v72_v15 = vmul.f32 %v71_v8, %v70_v9 }
 0x146   :  { %v73_v21 = vmul.f32 %v72_v15, %v314_v17 }
 0x148   :  { %v75_v29 = vadd.f32 %v74_v24, %v73_v21 }
 0x155   :  { %v88_v32 = vpop.permute.xlu2 %87 }
 0x156   :  { %v90_v33 = vsel %vm42_vm0, %v88_v32, 0.0 }
 0x157   :  { %91 = vadd.xlane.f32.xlu2 %v90_v33 }
 0x15d   :  { %v119_v34 = vpop.permute.xlu2 %118 }
 0x15e   :  { %v121_v35 = vsel %vm42_vm0, %v119_v34, 0.0 }
 0x15f   :  { %122 = vadd.xlane.f32.xlu0 %v121_v35 }
 0x165   :  { %v150_v36 = vpop.permute.xlu2 %149 }
 0x166   :  { %v152_v37 = vsel %vm42_vm0, %v150_v36, 0.0  ;;  %vm174_vm0 = vcmask 785408  }
 0x167   :  { %153 = vadd.xlane.f32.xlu1 %v152_v37 }
 0x1ca   :  { %v92_v41 = vpop.xlane.xlu2 %91 }
 0x1cb   :  { %v93_v42 = vmul.f32 0.032258064, %v92_v41 }
 0x1cd   :  { %v94_v43 = vadd.f32 1e-05, %v93_v42 }
 0x1cf   :  { %207 = vrsqrt.f32 %v94_v43  ;;  %vm101_vm6 = vweird.f32 %v94_v43 }
 0x1d2   :  { %v123_v45 = vpop.xlane.xlu0 %122 }
 0x1d3   :  { %v124_v46 = vmul.f32 0.032258064, %v123_v45 }
 0x1d5   :  { %v208_v48 = vpop.eup %207  ;;  %v125_v49 = vadd.f32 1e-05, %v124_v46 }
 0x1d6   :  { %v96_v50 = vmul.f32 %v208_v48, %v94_v43  ;;  %vm102_vm4 = vweird.f32 %v208_v48 }
 0x1d7   :  { %209 = vrsqrt.f32 %v125_v49  ;;  %vm103_vm8 = vmor %vm101_vm6, %vm102_vm4  ;;  %vm132_vm9 = vweird.f32 %v125_v49 }
 0x1d8   :  { %v97_v52 = vmul.f32 %v208_v48, %v96_v50 }
 0x1da   :  { %v98_v53 = vmul.f32 0.5, %v97_v52  ;;  %v154_v54 = vpop.xlane.xlu1 %153 }
 0x1db   :  { %v155_v55 = vmul.f32 0.032258064, %v154_v54 }
 0x1dc   :  { %v99_v59 = vsub.f32 1.5, %v98_v53 }
 0x1dd   :  { %v210_v57 = vpop.eup %209  ;;  %v156_v58 = vadd.f32 1e-05, %v155_v55 }
 0x1de   :  { %v127_v60 = vmul.f32 %v210_v57, %v125_v49  ;;  %v100_v63 = vmul.f32 %v208_v48, %v99_v59  ;;  %vm133_vm7 = vweird.f32 %v210_v57 }
 0x1df   :  { %211 = vrsqrt.f32 %v156_v58  ;;  %vm134_vm10 = vmor %vm132_vm9, %vm133_vm7  ;;  %vm163_vm12 = vweird.f32 %v156_v58 }
 0x1e0   :  { %v128_v62 = vmul.f32 %v210_v57, %v127_v60  ;;  %v104_v5 = vsel %vm103_vm8, %v208_v48, %v100_v63 }
 0x1e1   :  { %v105_v12 = vmul.f32 %v104_v5, %v71_v8 }
 0x1e2   :  { %v129_v0 = vmul.f32 0.5, %v128_v62 }
 0x1e3   :  { %v106_v18 = vmul.f32 %v105_v12, %v319_v22 }
 0x1e4   :  { %v130_v3 = vsub.f32 1.5, %v129_v0 }
 0x1e5   :  { %v212_v4 = vpop.eup %211  ;;  %v107_v27 = vadd.f32 %v106_v18, %v74_v24 }
 0x1e6   :  { %v131_v6 = vmul.f32 %v210_v57, %v130_v3  ;;  %v158_v7 = vmul.f32 %v212_v4, %v156_v58  ;;  %vm164_vm11 = vweird.f32 %v212_v4 }
 0x1e7   :  { %vm165_vm13 = vmor %vm163_vm12, %vm164_vm11  ;;  %v171_v17 = vsel %vm170_vm14, %v75_v29, %v107_v27 }
 0x1e8   :  { %v135_v10 = vsel %vm134_vm10, %v210_v57, %v131_v6  ;;  %v159_v11 = vmul.f32 %v212_v4, %v158_v7 }
 0x1e9   :  { %v136_v13 = vmul.f32 %v135_v10, %v71_v8 }
 0x1ea   :  { %v160_v14 = vmul.f32 0.5, %v159_v11 }
 0x1eb   :  { %v137_v20 = vmul.f32 %v136_v13, %v324_v26 }
 0x1ec   :  { %v161_v16 = vsub.f32 1.5, %v160_v14 }
 0x1ed   :  { %v138_v28 = vadd.f32 %v137_v20, %v74_v24 }
 0x1ee   :  { %v162_v19 = vmul.f32 %v212_v4, %v161_v16 }
 0x1ef   :  { %v173_v26 = vsel %vm172_vm15, %v171_v17, %v138_v28 }
 0x1f0   :  { %v166_v23 = vsel %vm165_vm13, %v212_v4, %v162_v19 }
 0x1f1   :  { %v167_v25 = vmul.f32 %v166_v23, %v71_v8 }
 0x1f3   :  { %v168_v31 = vmul.f32 %v167_v25, %v329_v30 }
 0x1f5   :  { %v169_v22 = vadd.f32 %v168_v31, %v74_v24 }
 0x1f7   :  { %v175_v32 = vsel %vm174_vm0, %v173_v26, %v169_v22 }
 0x1f8   :  { %176 = vst [vmem:[#allocation7] sm:$0xf] %v175_v32 }
 0x1f9   :  { %187 = dma.vmem_to_hbm [thread:$0]  %s183_s22, 64, %s185_s25, [#allocation4]  }
 0x1fa   :  { %277 = dma.done.wait [#allocation4], 64  }
 0x1fb   :  { %278 = vsyncadd [#allocation4], 4294967232 }
 0x1fc   :  { %192 = vsyncpa [#allocation3], 1 }
 0x1fd   :  { %193 = vsyncpa [#allocation4], 1 }
 0x1fe   :  { %194 = vsyncpa [#allocation5], 1 }

</bundles_post_ra>
